<compile_context>
chip_gen: v7x
topology: tpu7x:2x2x1
jax: 0.10.0
libtpu: 0.0.40
codegen_flags: <defaults>
</compile_context>

<pallas_src>
import functools

import jax
import jax.numpy as jnp
from jax.experimental import pallas as pl
from jax.experimental.pallas import tpu as pltpu

_LANE = 128
_SUBLANE = 8


def _round_up(v, m):
    return (v + m - 1) // m * m


def _mlp_kernel(n_layers, dp, x_ref, w_ref, b_ref, out_ref):
    """x_ref: [TB, Dp] f32, w_ref: [n_layers*Dp, Dp] bf16, b_ref: [n_layers, Dp] f32."""
    h = x_ref[...]                                            # [TB, Dp] f32
    for li in range(n_layers):
        w = w_ref[pl.ds(li * dp, dp), :]                      # [Dp, Dp] bf16 (static view)
        b = b_ref[pl.ds(li, 1), :]                            # [1, Dp]  f32
        h = jnp.dot(h.astype(jnp.bfloat16), w,
                    preferred_element_type=jnp.float32) + b   # f32 MXU accumulation
        if li < n_layers - 1:
            h = jnp.maximum(h, 0.0)                           # ReLU on hidden layers
    out_ref[...] = h                                          # lane-dense [TB, 128] store


def mlp_forward(x, weights, biases, *, batch_tile=128):
    """x: [B, in_dim].  weights[i]: [fan_in, fan_out] (torch weights pre-transposed)."""
    n_layers = len(weights)
    assert len(biases) == n_layers and n_layers >= 2
    B, in_dim = x.shape
    out_dim = int(weights[-1].shape[1])

    dims = [in_dim] + [int(w.shape[1]) for w in weights]
    dp = _round_up(max(dims), _LANE)

    # --- pack all parameters into two lane-padded slabs (1 DMA each) -------
    w_slab = jnp.zeros((n_layers * dp, dp), jnp.bfloat16)
    b_slab = jnp.zeros((n_layers, dp), jnp.float32)
    for i, (w, b) in enumerate(zip(weights, biases)):
        k, n = w.shape
        w_slab = w_slab.at[i * dp:i * dp + k, :n].set(w.astype(jnp.bfloat16))
        b_slab = b_slab.at[i, :n].set(b.astype(jnp.float32))

    # --- pad activations to lane-dense [Bp, Dp] tiles -----------------------
    tb = min(_round_up(B, _SUBLANE), batch_tile)
    bp = _round_up(B, tb)
    x_p = jnp.zeros((bp, dp), jnp.float32).at[:B, :in_dim].set(
        x.astype(jnp.float32))

    kernel = functools.partial(_mlp_kernel, n_layers, dp)

    out_p = pl.pallas_call(
        kernel,
        out_shape=jax.ShapeDtypeStruct((bp, dp), jnp.float32),
        grid=(bp // tb,),
        in_specs=[
            pl.BlockSpec((tb, dp), lambda i: (i, 0)),             # x batch tile
            pl.BlockSpec((n_layers * dp, dp), lambda i: (0, 0)),  # weight slab (resident)
            pl.BlockSpec((n_layers, dp), lambda i: (0, 0)),       # bias slab (resident)
        ],
        out_specs=pl.BlockSpec((tb, dp), lambda i: (i, 0)),
        compiler_params=pltpu.CompilerParams(
            dimension_semantics=("parallel",)),                   # shards batch across v7x TCs
    )(x_p, w_slab, b_slab)

    return out_p[:B, :out_dim]


def _reference_forward_f32(x, weights, biases):
    """Pure-JAX f32 reference mirroring the PyTorch forward."""
    h = x
    for w, b in zip(weights[:-1], biases[:-1]):
        h = jax.nn.relu(h @ w + b)
    return h @ weights[-1] + biases[-1]


def _reference_forward_bf16(x, weights, biases):
    """Reference with the same bf16-operand / f32-accumulate dots as the kernel."""
    h = x.astype(jnp.float32)
    n = len(weights)
    for i, (w, b) in enumerate(zip(weights, biases)):
        h = jnp.dot(h.astype(jnp.bfloat16), w.astype(jnp.bfloat16),
                    preferred_element_type=jnp.float32) + b.astype(jnp.float32)
        if i < n - 1:
            h = jnp.maximum(h, 0.0)
    return h


def _init_params(key, in_dim, out_dim, hidden_layer_sizes):
    """Synthetic init matching nn.Linear shapes; weights already [fan_in, fan_out]."""
    dims = [in_dim] + list(hidden_layer_sizes) + [out_dim]
    weights, biases = [], []
    for i in range(len(dims) - 1):
        fan_in, fan_out = dims[i], dims[i + 1]
        key, kw, kb = jax.random.split(key, 3)
        bound = 1.0 / jnp.sqrt(fan_in)
        weights.append(jax.random.uniform(kw, (fan_in, fan_out), jnp.float32,
                                          minval=-bound, maxval=bound))
        biases.append(jax.random.uniform(kb, (fan_out,), jnp.float32,
                                         minval=-bound, maxval=bound))
    return weights, biases


if __name__ == "__main__":
    # Shapes consistent with the module: 37 input features
    # (35 measurements + 2 actions), two hidden layers, small output head.
    in_dim = 37
    hidden_layer_sizes = (32, 32)
    out_dim = 2

    key = jax.random.PRNGKey(0)
    key, kp = jax.random.split(key)
    weights, biases = _init_params(kp, in_dim, out_dim, hidden_layer_sizes)

    # Two batch sizes: single-tile (grid=(1,)) and multi-tile batch-parallel grid.
    for batch in (8, 200):
        key, kx = jax.random.split(key)
        x = jax.random.normal(kx, (batch, in_dim), jnp.float32)

        out = jax.block_until_ready(mlp_forward(x, weights, biases))
        assert out.shape == (batch, out_dim)

        ref_bf16 = _reference_forward_bf16(x, weights, biases)
        ref_f32 = _reference_forward_f32(x, weights, biases)
        assert jnp.allclose(out, ref_bf16, atol=2e-4, rtol=2e-4), (
            f"B={batch}: max abs err vs bf16 ref "
            f"{jnp.max(jnp.abs(out - ref_bf16))}")
        assert jnp.allclose(out, ref_f32, atol=3e-2, rtol=3e-2), (
            f"B={batch}: max abs err vs f32 ref "
            f"{jnp.max(jnp.abs(out - ref_f32))}")

    print("KERNEL_OK")
</pallas_src>

<mosaic_0001>
module attributes {stable_mosaic.version = 11 : i64} {
  func.func @_mlp_kernel(%arg0: i32, %arg1: memref<8x128xf32, #tpu.memory_space<vmem>>, %arg2: memref<384x128xbf16, #tpu.memory_space<vmem>>, %arg3: memref<3x128xf32, #tpu.memory_space<vmem>>, %arg4: memref<8x128xf32, #tpu.memory_space<vmem>>) attributes {dimension_semantics = [#tpu.dimension_semantics<parallel>], iteration_bounds = array<i64: 1>, scalar_prefetch = 0 : i64, scratch_operands = 0 : i64, tpu.core_type = #tpu.core_type<tc>, window_params = [{transform_indices = @transform_0, window_bounds = array<i64: 8, 128>}, {pipeline_mode = #tpu.pipeline_mode<synchronous>, transform_indices = @transform_1, window_bounds = array<i64: 384, 128>}, {pipeline_mode = #tpu.pipeline_mode<synchronous>, transform_indices = @transform_2, window_bounds = array<i64: 3, 128>}, {transform_indices = @transform_3, window_bounds = array<i64: 8, 128>}]} {
    %c0 = arith.constant 0 : index
    %c0_0 = arith.constant 0 : index
    %0 = vector.load %arg1[%c0, %c0_0] : memref<8x128xf32, #tpu.memory_space<vmem>>, vector<8x128xf32>
    %c0_1 = arith.constant 0 : index
    %c0_2 = arith.constant 0 : index
    %1 = vector.load %arg2[%c0_1, %c0_2] : memref<384x128xbf16, #tpu.memory_space<vmem>>, vector<128x128xbf16>
    %c0_3 = arith.constant 0 : index
    %c0_4 = arith.constant 0 : index
    %2 = vector.load %arg3[%c0_3, %c0_4] : memref<3x128xf32, #tpu.memory_space<vmem>>, vector<1x128xf32>
    %3 = arith.truncf %0 : vector<8x128xf32> to vector<8x128xbf16>
    %cst = arith.constant dense<0.000000e+00> : vector<8x128xf32>
    %4 = tpu.matmul %3, %1, %cst {dimension_numbers = #tpu.dot_dimension_numbers<[1], [0], [0], [1], [0, 0, 1, 1], [], []>} : vector<8x128xbf16>, vector<128x128xbf16>, vector<8x128xf32> -> vector<8x128xf32>
    %5 = vector.broadcast %2 : vector<1x128xf32> to vector<8x128xf32>
    %6 = arith.addf %4, %5 : vector<8x128xf32>
    %cst_5 = arith.constant 0.000000e+00 : f32
    %7 = vector.broadcast %cst_5 : f32 to vector<8x128xf32>
    %8 = arith.maximumf %6, %7 : vector<8x128xf32>
    %c128 = arith.constant 128 : index
    %c0_6 = arith.constant 0 : index
    %9 = vector.load %arg2[%c128, %c0_6] : memref<384x128xbf16, #tpu.memory_space<vmem>>, vector<128x128xbf16>
    %c1 = arith.constant 1 : index
    %c0_7 = arith.constant 0 : index
    %10 = vector.load %arg3[%c1, %c0_7] : memref<3x128xf32, #tpu.memory_space<vmem>>, vector<1x128xf32>
    %11 = arith.truncf %8 : vector<8x128xf32> to vector<8x128xbf16>
    %cst_8 = arith.constant dense<0.000000e+00> : vector<8x128xf32>
    %12 = tpu.matmul %11, %9, %cst_8 {dimension_numbers = #tpu.dot_dimension_numbers<[1], [0], [0], [1], [0, 0, 1, 1], [], []>} : vector<8x128xbf16>, vector<128x128xbf16>, vector<8x128xf32> -> vector<8x128xf32>
    %13 = vector.broadcast %10 : vector<1x128xf32> to vector<8x128xf32>
    %14 = arith.addf %12, %13 : vector<8x128xf32>
    %cst_9 = arith.constant 0.000000e+00 : f32
    %15 = vector.broadcast %cst_9 : f32 to vector<8x128xf32>
    %16 = arith.maximumf %14, %15 : vector<8x128xf32>
    %c256 = arith.constant 256 : index
    %c0_10 = arith.constant 0 : index
    %17 = vector.load %arg2[%c256, %c0_10] : memref<384x128xbf16, #tpu.memory_space<vmem>>, vector<128x128xbf16>
    %c2 = arith.constant 2 : index
    %c0_11 = arith.constant 0 : index
    %18 = vector.load %arg3[%c2, %c0_11] : memref<3x128xf32, #tpu.memory_space<vmem>>, vector<1x128xf32>
    %19 = arith.truncf %16 : vector<8x128xf32> to vector<8x128xbf16>
    %cst_12 = arith.constant dense<0.000000e+00> : vector<8x128xf32>
    %20 = tpu.matmul %19, %17, %cst_12 {dimension_numbers = #tpu.dot_dimension_numbers<[1], [0], [0], [1], [0, 0, 1, 1], [], []>} : vector<8x128xbf16>, vector<128x128xbf16>, vector<8x128xf32> -> vector<8x128xf32>
    %21 = vector.broadcast %18 : vector<1x128xf32> to vector<8x128xf32>
    %22 = arith.addf %20, %21 : vector<8x128xf32>
    %c0_13 = arith.constant 0 : index
    %c0_14 = arith.constant 0 : index
    %23 = vector.load %arg4[%c0_13, %c0_14] : memref<8x128xf32, #tpu.memory_space<vmem>>, vector<8x128xf32>
    tpu.vector_store %arg4[%c0_13, %c0_14], %22 {strides = array<i32>} : memref<8x128xf32, #tpu.memory_space<vmem>>, vector<8x128xf32>,
    return
  }
  func.func @transform_0(%arg0: i32) -> (i32, i32) {
    %c0_i32 = arith.constant 0 : i32
    %c0_i32_0 = arith.constant 0 : i32
    return %arg0, %c0_i32 : i32, i32
  }
  func.func @transform_1(%arg0: i32) -> (i32, i32) {
    %c0_i32 = arith.constant 0 : i32
    %c0_i32_0 = arith.constant 0 : i32
    %c0_i32_1 = arith.constant 0 : i32
    return %c0_i32, %c0_i32_0 : i32, i32
  }
  func.func @transform_2(%arg0: i32) -> (i32, i32) {
    %c0_i32 = arith.constant 0 : i32
    %c0_i32_0 = arith.constant 0 : i32
    %c0_i32_1 = arith.constant 0 : i32
    return %c0_i32, %c0_i32_0 : i32, i32
  }
  func.func @transform_3(%arg0: i32) -> (i32, i32) {
    %c0_i32 = arith.constant 0 : i32
    %c0_i32_0 = arith.constant 0 : i32
    return %arg0, %c0_i32 : i32, i32
  }
}

</mosaic_0001>

<bundles_post_ra>
// kernel: tpu_custom_call.1
= control target key start
LH: loop header
LB: loop body
LE: loop exit
PB: predicated region body
PF: predicated region fallthrough
CT: control target
= control target key end

     0   :  { %8 = vsyncpa [#allocation3], 0  ;;  %s718_s0 = inlined_call_operand.hbm [shape: f32[8,128], index: 0, kind: input, shape index: {}]   ;;  %s719_s1 = inlined_call_operand.hbm [shape: bf16[384,128], index: 1, kind: input, shape index: {}]   ;;  %s720_s2 = inlined_call_operand.vmem [shape: f32[3,128], index: 2, kind: input, shape index: {}]   ;;  %s721_s3 = inlined_call_operand.hbm [shape: f32[8,128], index: 3, kind: output, shape index: {}]  }
   0x1   :  { %9 = vsyncpa [#allocation6], 0 }
   0x2   :  { %10 = vsyncpa [#allocation4], 0  ;;  %s609_s12 = smov [#allocation2]   ;;  %s610_s14 = smov [#allocation5]  }
   0x3   :  { %s17_s13 = sshll.u32 %s609_s12, 4  ;;  %s26_s15 = sshll.u32 %s610_s14, 4  ;;  %s18_s13 = int_to_ptr.vmem [resolvable:$true] %s17_s13  ;;  %s636_s15 = int_to_ptr.vmem [resolvable:$true] %s26_s15 }
   0x4   :  { %s537_s18 = scalar_lea.hbm %s718_s0, 128 }
   0x5   :  { %p538_p0 = scmp.ne.s32.totalorder %s718_s0, %s537_s18  ;;  %p541_p1 = scmp.lt.u32.totalorder %s537_s18, %s718_s0 }
   0x7   :  { %p543_p2 = pnand %p541_p1, %p538_p0 }
   0x9   :  { %546 = shalt.err (!%p543_p2)
}
   0xa   :  { %s547_s23 = scalar_lea.vmem %s18_s13, 128  ;;  %p552_p4 = scmp.lt.s32.totalorder %s18_s13, %s18_s13 }
   0xb   :  { %p548_p3 = scmp.ne.s32.totalorder %s18_s13, %s547_s23  ;;  %p553_p5 = scmp.lt.s32.totalorder %s547_s23, %s547_s23 }
   0xd   :  { %p554_p6 = por %p553_p5, %p552_p4 }
   0xf   :  { %p555_p7 = pnand %p554_p6, %p548_p3 }
  0x11   :  { %558 = shalt.err (!%p555_p7)
}
  0x12   :  { %20 = dma.hbm_to_vmem [thread:$0]  %s718_s0, 128, %s18_s13, [#allocation3]  }
  0x13   :  { %s559_s28 = scalar_lea.hbm %s719_s1, 3072 }
  0x14   :  { %p560_p8 = scmp.ne.s32.totalorder %s719_s1, %s559_s28  ;;  %p563_p9 = scmp.lt.u32.totalorder %s559_s28, %s719_s1 }
  0x16   :  { %p565_p10 = pnand %p563_p9, %p560_p8 }
  0x18   :  { %568 = shalt.err (!%p565_p10)
}
  0x19   :  { %s569_s6 = scalar_lea.vmem %s636_s15, 3072  ;;  %p574_p12 = scmp.lt.s32.totalorder %s636_s15, %s636_s15 }
  0x1a   :  { %p570_p11 = scmp.ne.s32.totalorder %s636_s15, %s569_s6  ;;  %p575_p13 = scmp.lt.s32.totalorder %s569_s6, %s569_s6 }
  0x1c   :  { %p576_p0 = por %p575_p13, %p574_p12 }
  0x1e   :  { %p577_p1 = pnand %p576_p0, %p570_p11 }
  0x20   :  { %580 = shalt.err (!%p577_p1)
}
  0x21   :  { %s611_s0 = smov 64   ;;  %s612_s7 = smov 4  }
  0x22   :  { %32 = dma.hbm_to_vmem [thread:$0]  %s719_s1, 3072, %s636_s15, [#allocation6], %s611_s0, %s611_s0, %s612_s7  }
  0x23   :  { %603 = dma.done.wait [#allocation3], 128  }
  0x24   :  { %604 = vsyncadd [#allocation3], 4294967168 }
  0x25   :  { %605 = dma.done.wait [#allocation6], 3072  }
  0x26   :  { %606 = vsyncadd [#allocation6], 4294964224  ;;  %v613_v0 = vmov 0.0   ;;  %vm614_vm0 = vmmov 0   ;;  %v513_v1 = vld [vmem:[#allocation5] sm:$0xff]   ;;  %v514_v2 = vld [vmem:[#allocation5 + $0x8] sm:$0xff]  }
  0x27   :  { %446 = vmatprep.subr.bf16.mxu0 %v613_v0  ;;  %462 = vmatprep.mubr.msk.bf16.mxu0 %vm614_vm0, %v613_v0  ;;  %v515_v3 = vld [vmem:[#allocation5 + $0x10] sm:$0xff]   ;;  %v521_v4 = vld [vmem:[#allocation5 + $0x40] sm:$0xff]   ;;  %v516_v5 = vld [vmem:[#allocation5 + $0x18] sm:$0xff]   ;;  %s615_s15 = smov [#allocation7]  }
  0x28   :  { %466 = vmatprep.subr.bf16.mxu1 %v613_v0  ;;  %482 = vmatprep.mubr.msk.bf16.mxu1 %vm614_vm0, %v613_v0  ;;  %v522_v6 = vld [vmem:[#allocation5 + $0x48] sm:$0xff]   ;;  %v517_v7 = vld [vmem:[#allocation5 + $0x20] sm:$0xff]   ;;  %v523_v8 = vld [vmem:[#allocation5 + $0x50] sm:$0xff]   ;;  %s382_s16 = sshll.u32 %s615_s15, 4  ;;  %s383_s16 = int_to_ptr.vmem [resolvable:$true] %s382_s16 }
  0x29   :  { %447 = vmatpush3.bf16.msra.mxu0 %v513_v1  ;;  %467 = vmatpush3.bf16.msra.mxu1 %v521_v4  ;;  %v518_v9 = vld [vmem:[#allocation5 + $0x28] sm:$0xff]   ;;  %v524_v10 = vld [vmem:[#allocation5 + $0x58] sm:$0xff]   ;;  %v519_v11 = vld [vmem:[#allocation5 + $0x30] sm:$0xff]   ;;  %s581_s17 = scalar_lea.vmem %s383_s16, 128  ;;  %p586_p3 = scmp.lt.s32.totalorder %s383_s16, %s383_s16 }
  0x2a   :  { %448 = vmatprep.subr.bf16.mxu0 %v613_v0  ;;  %468 = vmatprep.subr.bf16.mxu1 %v613_v0  ;;  %v525_v12 = vld [vmem:[#allocation5 + $0x60] sm:$0xff]   ;;  %v520_v13 = vld [vmem:[#allocation5 + $0x38] sm:$0xff]   ;;  %v526_v15 = vld [vmem:[#allocation5 + $0x68] sm:$0xff]   ;;  %p582_p2 = scmp.ne.s32.totalorder %s383_s16, %s581_s17  ;;  %p587_p4 = scmp.lt.s32.totalorder %s581_s17, %s581_s17 }
  0x2b   :  { %v42_v14 = vld [vmem:[#allocation2] sm:$0xff]  ;;  %v527_v17 = vld [vmem:[#allocation5 + $0x70] sm:$0xff]   ;;  %v529_v19 = vld [vmem:[#allocation5 + $0x80] sm:$0xff]  }
  0x2c   :  { %v60_v16 = vpack.c.bf16 %v42_v14, %v42_v14  ;;  %v528_v18 = vld [vmem:[#allocation5 + $0x78] sm:$0xff]   ;;  %v530_v20 = vld [vmem:[#allocation5 + $0x88] sm:$0xff]   ;;  %v531_v21 = vld [vmem:[#allocation5 + $0x90] sm:$0xff]   ;;  %p588_p5 = por %p587_p4, %p586_p3 }
  0x2d   :  { %449 = vmatpush3.bf16.msra.mxu0 %v514_v2  ;;  %469 = vmatpush3.bf16.msra.mxu1 %v522_v6  ;;  %v532_v22 = vld [vmem:[#allocation5 + $0x98] sm:$0xff]   ;;  %v533_v23 = vld [vmem:[#allocation5 + $0xa0] sm:$0xff]   ;;  %v534_v24 = vld [vmem:[#allocation5 + $0xa8] sm:$0xff]  }
  0x2e   :  { %450 = vmatprep.subr.bf16.mxu0 %v613_v0  ;;  %470 = vmatprep.subr.bf16.mxu1 %v613_v0  ;;  %v392_v25 = vld [vmem:[%s720_s2] ss:$0 sm:$0xff]  ;;  %v535_v33 = vld [vmem:[#allocation5 + $0xb0] sm:$0xff]   ;;  %v401_v35 = vld [vmem:[%s720_s2 + $0x1] ss:$0 sm:$0xff]  ;;  %p589_p6 = pnand %p588_p5, %p582_p2 }
  0x2f   :  { %v536_v34 = vld [vmem:[#allocation5 + $0xb8] sm:$0xff]  }
  0x30   :  { %v410_v43 = vld [vmem:[%s720_s2 + $0x2] ss:$0 sm:$0xff] }
  0x31   :  { %451 = vmatpush3.bf16.msra.mxu0 %v515_v3  ;;  %471 = vmatpush3.bf16.msra.mxu1 %v523_v8 }
  0x32   :  { %452 = vmatprep.subr.bf16.mxu0 %v613_v0  ;;  %472 = vmatprep.subr.bf16.mxu1 %v613_v0 }
  0x35   :  { %453 = vmatpush3.bf16.msra.mxu0 %v516_v5  ;;  %473 = vmatpush3.bf16.msra.mxu1 %v524_v10 }
  0x36   :  { %454 = vmatprep.subr.bf16.mxu0 %v613_v0  ;;  %474 = vmatprep.subr.bf16.mxu1 %v613_v0 }
  0x39   :  { %455 = vmatpush3.bf16.msra.mxu0 %v517_v7  ;;  %475 = vmatpush3.bf16.msra.mxu1 %v525_v12 }
  0x3a   :  { %456 = vmatprep.subr.bf16.mxu0 %v613_v0  ;;  %476 = vmatprep.subr.bf16.mxu1 %v613_v0 }
  0x3d   :  { %457 = vmatpush3.bf16.msra.mxu0 %v518_v9  ;;  %477 = vmatpush3.bf16.msra.mxu1 %v526_v15 }
  0x3e   :  { %458 = vmatprep.subr.bf16.mxu0 %v613_v0  ;;  %478 = vmatprep.subr.bf16.mxu1 %v613_v0 }
  0x41   :  { %459 = vmatpush3.bf16.msra.mxu0 %v519_v11  ;;  %479 = vmatpush3.bf16.msra.mxu1 %v527_v17 }
  0x42   :  { %460 = vmatprep.subr.bf16.mxu0 %v613_v0  ;;  %480 = vmatprep.subr.bf16.mxu1 %v613_v0 }
  0x45   :  { %461 = vmatpush3.bf16.msra.mxu0 %v520_v13  ;;  %481 = vmatpush3.bf16.msra.mxu1 %v528_v18 }
  0x46   :  { %486 = vmatprep.subr.bf16.mxu0 %v613_v0 }
  0x48   :  { %463 = vmatmul.mubr.bf16.vlgmr.msra.gmra.mrb[0].mxu0 %v60_v16 }
  0x49   :  { %502 = vmatprep.mubr.msk.bf16.mxu0 %vm614_vm0, %v613_v0  ;;  %487 = vmatpush3.bf16.msra.mxu0 %v529_v19 }
  0x4a   :  { %488 = vmatprep.subr.bf16.mxu0 %v613_v0 }
  0x4d   :  { %489 = vmatpush3.bf16.msra.mxu0 %v530_v20 }
  0x4e   :  { %490 = vmatprep.subr.bf16.mxu0 %v613_v0 }
  0x51   :  { %491 = vmatpush3.bf16.msra.mxu0 %v531_v21 }
  0x52   :  { %492 = vmatprep.subr.bf16.mxu0 %v613_v0 }
  0x55   :  { %493 = vmatpush3.bf16.msra.mxu0 %v532_v22 }
  0x56   :  { %494 = vmatprep.subr.bf16.mxu0 %v613_v0 }
  0x59   :  { %495 = vmatpush3.bf16.msra.mxu0 %v533_v23 }
  0x5a   :  { %496 = vmatprep.subr.bf16.mxu0 %v613_v0 }
  0x5d   :  { %497 = vmatpush3.bf16.msra.mxu0 %v534_v24 }
  0x5e   :  { %498 = vmatprep.subr.bf16.mxu0 %v613_v0 }
  0x61   :  { %499 = vmatpush3.bf16.msra.mxu0 %v535_v33 }
  0x62   :  { %500 = vmatprep.subr.bf16.mxu0 %v613_v0 }
  0x65   :  { %501 = vmatpush3.bf16.msra.mxu0 %v536_v34 }
 0x11b   :  { %v147_v26 = vpop.f32.mrb[0].mxu0 }
 0x11c   :  { %v148_v27 = vadd.f32 %v392_v25, %v147_v26  ;;  %v464_v28 = vpop.f32.mrb[1].mxu0 }
 0x11d   :  { %v150_v29 = vpop.f32.mrb[2].mxu0 }
 0x11e   :  { %v153_v30 = vmax.f32 %v148_v27, 0.0  ;;  %v465_v31 = vpop.f32.mrb[3].mxu0 }
 0x120   :  { %v171_v32 = vpack.c.bf16 %v153_v30, %v153_v30 }
 0x122   :  { %483 = vmatmul.mubr.bf16.vlgmr.msra.gmra.mrb[0].mxu1 %v171_v32 }
 0x1f5   :  { %v258_v36 = vpop.f32.mrb[0].mxu1 }
 0x1f6   :  { %v259_v37 = vadd.f32 %v401_v35, %v258_v36  ;;  %v484_v38 = vpop.f32.mrb[1].mxu1 }
 0x1f7   :  { %v261_v39 = vpop.f32.mrb[2].mxu1 }
 0x1f8   :  { %v264_v40 = vmax.f32 %v259_v37, 0.0  ;;  %v485_v41 = vpop.f32.mrb[3].mxu1 }
 0x1fa   :  { %v282_v42 = vpack.c.bf16 %v264_v40, %v264_v40 }
 0x1fc   :  { %503 = vmatmul.mubr.bf16.vlgmr.msra.gmra.mrb[4].mxu0 %v282_v42 }
 0x2cf   :  { %v369_v44 = vpop.f32.mrb[4].mxu0 }
 0x2d0   :  { %v370_v45 = vadd.f32 %v410_v43, %v369_v44  ;;  %v504_v46 = vpop.f32.mrb[5].mxu0 }
 0x2d1   :  { %v372_v47 = vpop.f32.mrb[6].mxu0 }
 0x2d2   :  { %375 = vst [vmem:[#allocation7] sm:$0xff] %v370_v45  ;;  %v505_v48 = vpop.f32.mrb[7].mxu0 }
 0x2d3   :  { %592 = shalt.err (!%p589_p6)
}
 0x2d4   :  { %s593_s2 = scalar_lea.hbm %s721_s3, 128 }
 0x2d5   :  { %p594_p7 = scmp.ne.s32.totalorder %s721_s3, %s593_s2  ;;  %p597_p8 = scmp.lt.u32.totalorder %s593_s2, %s721_s3 }
 0x2d7   :  { %p599_p9 = pnand %p597_p8, %p594_p7 }
 0x2d9   :  { %602 = shalt.err (!%p599_p9)
}
 0x2da   :  { %385 = dma.vmem_to_hbm [thread:$0]  %s383_s16, 128, %s721_s3, [#allocation4]  }
 0x2db   :  { %607 = dma.done.wait [#allocation4], 128  }
 0x2dc   :  { %608 = vsyncadd [#allocation4], 4294967168 }
 0x2dd   :  { %389 = vsyncpa [#allocation3], 1 }
 0x2de   :  { %390 = vsyncpa [#allocation6], 1 }
 0x2df   :  { %391 = vsyncpa [#allocation4], 1 }

</bundles_post_ra>
